<compile_context>
chip_gen: v6e
topology: v6e:2x2x1
jax: 0.10.0
libtpu: 0.0.40
codegen_flags: <defaults>
</compile_context>

<pallas_src>
import functools
import math

import jax
import jax.numpy as jnp
from jax.experimental import pallas as pl
from jax.experimental.pallas import tpu as pltpu


# ----------------------------------------------------------------------------
# Kernel A: ImageProjModel  (Linear -> per-token LayerNorm), grid over tokens
# ----------------------------------------------------------------------------
def _image_proj_kernel(x_ref, w_ref, b_ref, g_ref, beta_ref, o_ref, *, eps):
    # x: (B, C) f32, w: (C, D) bf16 column-block for token t, b/g/beta: (1, D) f32
    y = jnp.dot(x_ref[...].astype(jnp.bfloat16), w_ref[...],
                preferred_element_type=jnp.float32) + b_ref[...]
    mu = jnp.mean(y, axis=-1, keepdims=True)
    var = jnp.mean((y - mu) ** 2, axis=-1, keepdims=True)
    yn = (y - mu) * jax.lax.rsqrt(var + eps)
    o_ref[...] = yn * g_ref[...] + beta_ref[...]


def image_proj_model(image_embeds, w, b, gamma, beta, *, num_tokens, hidden):
    B, C = image_embeds.shape
    T, D = num_tokens, hidden
    w_bf16 = w.astype(jnp.bfloat16)                     # (C, T*D), half DMA traffic
    kern = functools.partial(_image_proj_kernel, eps=1e-5)
    out = pl.pallas_call(
        kern,
        out_shape=jax.ShapeDtypeStruct((B, T * D), jnp.float32),
        grid=(T,),
        in_specs=[
            pl.BlockSpec((B, C), lambda t: (0, 0)),
            pl.BlockSpec((C, D), lambda t: (0, t)),     # stream W column blocks
            pl.BlockSpec((1, D), lambda t: (0, t)),
            pl.BlockSpec((1, D), lambda t: (0, 0)),
            pl.BlockSpec((1, D), lambda t: (0, 0)),
        ],
        out_specs=pl.BlockSpec((B, D), lambda t: (0, t)),
        compiler_params=pltpu.CompilerParams(dimension_semantics=("parallel",)),
    )(image_embeds, w_bf16, b.reshape(1, -1), gamma.reshape(1, -1), beta.reshape(1, -1))
    return out.reshape(B, T, D)


# ----------------------------------------------------------------------------
# Kernel B: generic tiled bf16 matmul (used for batched QKV / K_ip,V_ip projections)
# ----------------------------------------------------------------------------
def _matmul_kernel(x_ref, w_ref, o_ref, acc_ref):
    @pl.when(pl.program_id(2) == 0)
    def _init():
        acc_ref[...] = jnp.zeros_like(acc_ref)

    acc_ref[...] += jnp.dot(x_ref[...].astype(jnp.bfloat16), w_ref[...],
                            preferred_element_type=jnp.float32)

    @pl.when(pl.program_id(2) == pl.num_programs(2) - 1)
    def _fin():
        o_ref[...] = acc_ref[...].astype(o_ref.dtype)


def matmul_bf16(x, w_bf16, *, out_dtype=jnp.float32, tm=256, tn=512, tk=512):
    M, K = x.shape
    K2, N = w_bf16.shape
    assert K == K2
    tm, tn, tk = min(tm, M), min(tn, N), min(tk, K)
    # demo shapes divide evenly; production would add cdiv + masking
    assert M % tm == 0 and N % tn == 0 and K % tk == 0
    return pl.pallas_call(
        _matmul_kernel,
        out_shape=jax.ShapeDtypeStruct((M, N), out_dtype),
        grid=(M // tm, N // tn, K // tk),
        in_specs=[pl.BlockSpec((tm, tk), lambda i, j, k: (i, k)),
                  pl.BlockSpec((tk, tn), lambda i, j, k: (k, j))],
        out_specs=pl.BlockSpec((tm, tn), lambda i, j, k: (i, j)),
        scratch_shapes=[pltpu.VMEM((tm, tn), jnp.float32)],
        compiler_params=pltpu.CompilerParams(
            dimension_semantics=("parallel", "parallel", "arbitrary")),
    )(x, w_bf16)


# ----------------------------------------------------------------------------
# Kernel C: joint attention with IP-adapter injection (per batch element)
#   (FluxIPAdapterJointAttnProcessor2_0 semantics on the fused txt+img sequence)
# ----------------------------------------------------------------------------
def _ip_attn_kernel(q_ref, k_ref, v_ref, ipk_ref, ipv_ref, wo_ref, o_ref,
                    *, S_txt, ip_scale):
    D = q_ref.shape[-1]
    sm_scale = 1.0 / math.sqrt(D)
    dn = (((1,), (1,)), ((), ()))          # contract last axes of both operands

    q = q_ref[...]                          # (S, D) f32
    qb = q.astype(jnp.bfloat16)
    kb = k_ref[...].astype(jnp.bfloat16)
    vb = v_ref[...].astype(jnp.bfloat16)

    # self attention over the joint txt+img sequence
    s = jax.lax.dot_general(qb, kb, dn, preferred_element_type=jnp.float32) * sm_scale
    s = s - jnp.max(s, axis=-1, keepdims=True)
    p = jnp.exp(s)
    p = p * pl.reciprocal(jnp.sum(p, axis=-1, keepdims=True), approx=True)
    ctx = jnp.dot(p.astype(jnp.bfloat16), vb, preferred_element_type=jnp.float32)
    attn = jnp.dot(ctx.astype(jnp.bfloat16), wo_ref[...],
                   preferred_element_type=jnp.float32)

    # IP-adapter path on the image rows only (text rows untouched)
    qi = q[S_txt:, :].astype(jnp.bfloat16)                  # (S_img, D)
    ipkb = ipk_ref[...].astype(jnp.bfloat16)                # (T, D)
    ipvb = ipv_ref[...].astype(jnp.bfloat16)
    s2 = jax.lax.dot_general(qi, ipkb, dn, preferred_element_type=jnp.float32) * sm_scale
    s2 = s2 - jnp.max(s2, axis=-1, keepdims=True)
    p2 = jnp.exp(s2)
    p2 = p2 * pl.reciprocal(jnp.sum(p2, axis=-1, keepdims=True), approx=True)
    ip_attn = jnp.dot(p2.astype(jnp.bfloat16), ipvb, preferred_element_type=jnp.float32)

    o_ref[:S_txt, :] = attn[:S_txt, :]
    o_ref[S_txt:, :] = attn[S_txt:, :] + jnp.float32(ip_scale) * ip_attn


def flux_ip_attention(x, ip_tokens, params, *, S_txt, ip_scale):
    B, S, D = x.shape
    T = ip_tokens.shape[1]

    # bf16 weights at call time (halves weight DMA / VMEM footprint)
    w_qkv = jnp.concatenate(
        [params["wq"], params["wk"], params["wv"]], axis=1).astype(jnp.bfloat16)
    w_ipkv = jnp.concatenate(
        [params["wk_ip"], params["wv_ip"]], axis=1).astype(jnp.bfloat16)
    wo_bf16 = params["wo"].astype(jnp.bfloat16)

    # batched projections: fill the MXU with B*S (resp. B*T) rows at once
    qkv = matmul_bf16(x.reshape(B * S, D), w_qkv).reshape(B, S, 3 * D)
    q, k, v = qkv[..., :D], qkv[..., D:2 * D], qkv[..., 2 * D:]
    ipkv = matmul_bf16(ip_tokens.reshape(B * T, D), w_ipkv).reshape(B, T, 2 * D)
    ipk, ipv = ipkv[..., :D], ipkv[..., D:]

    kern = functools.partial(_ip_attn_kernel, S_txt=S_txt, ip_scale=ip_scale)
    seq_spec = pl.BlockSpec((None, S, D), lambda b: (b, 0, 0))   # squeezed batch dim
    ip_spec = pl.BlockSpec((None, T, D), lambda b: (b, 0, 0))
    w_spec = pl.BlockSpec((D, D), lambda b: (0, 0))
    return pl.pallas_call(
        kern,
        out_shape=jax.ShapeDtypeStruct((B, S, D), jnp.float32),
        grid=(B,),
        in_specs=[seq_spec, seq_spec, seq_spec, ip_spec, ip_spec, w_spec],
        out_specs=seq_spec,
        compiler_params=pltpu.CompilerParams(dimension_semantics=("parallel",)),
    )(q, k, v, ipk, ipv, wo_bf16)


# ----------------------------------------------------------------------------
# Plain-JAX glue: parameter init, timestep embedding, embedders
# ----------------------------------------------------------------------------
def timestep_embedding(t, dim):
    half = dim // 2
    freqs = jnp.exp(-math.log(10000.0) * jnp.arange(half, dtype=jnp.float32) / half)
    args = t.astype(jnp.float32)[:, None] * freqs[None, :]
    return jnp.concatenate([jnp.cos(args), jnp.sin(args)], axis=-1)


def init_params(key, *, clip_dim, num_tokens, hidden, in_channels, joint_dim,
                pooled_dim, t_dim):
    keys = jax.random.split(key, 12)

    def lin(k, fan_in, fan_out, scale=1.0):
        return (jax.random.normal(k, (fan_in, fan_out), jnp.float32)
                * (scale / math.sqrt(fan_in)))

    p = {}
    # ImageProjModel
    p["proj_w"] = lin(keys[0], clip_dim, num_tokens * hidden)
    p["proj_b"] = jnp.zeros((num_tokens * hidden,), jnp.float32)
    p["ln_g"] = jnp.ones((hidden,), jnp.float32)
    p["ln_b"] = jnp.zeros((hidden,), jnp.float32)
    # stand-in transformer embedders
    p["x_emb"] = lin(keys[1], in_channels, hidden)
    p["ctx_emb"] = lin(keys[2], joint_dim, hidden)
    # joint attention (Q/K/V/O) + IP-adapter projections (to_k_ip / to_v_ip)
    p["wq"] = lin(keys[3], hidden, hidden)
    p["wk"] = lin(keys[4], hidden, hidden)
    p["wv"] = lin(keys[5], hidden, hidden)
    p["wo"] = lin(keys[6], hidden, hidden)
    p["wk_ip"] = lin(keys[7], hidden, hidden)
    p["wv_ip"] = lin(keys[8], hidden, hidden)
    # timestep / pooled-text conditioning (AdaLN-style scale/shift)
    p["w_time"] = lin(keys[9], t_dim, 2 * hidden, scale=0.1)
    p["w_pool"] = lin(keys[10], pooled_dim, 2 * hidden, scale=0.1)
    # projection back to latent channels (noise prediction)
    p["proj_out"] = lin(keys[11], hidden, in_channels)
    return p


class FluxIPAdapterPallas:
    """Pallas stand-in for FluxIPAdapter.forward."""

    def __init__(self, params, *, num_tokens, hidden, t_dim, ip_scale=1.0):
        self.params = params
        self.num_tokens = num_tokens
        self.hidden = hidden
        self.t_dim = t_dim
        self.ip_scale = ip_scale

    def __call__(self, hidden_states, timesteps, encoder_hidden_states,
                 pooled_prompt_embeds, image_embeds, text_ids, img_ids, guidance=None):
        p = self.params
        S_txt = encoder_hidden_states.shape[1]

        # 1) ip_tokens = self.image_proj_model(image_embeds)  [Pallas kernel A]
        ip_tokens = image_proj_model(
            image_embeds, p["proj_w"], p["proj_b"], p["ln_g"], p["ln_b"],
            num_tokens=self.num_tokens, hidden=self.hidden)

        # 2) transformer(...) stand-in  [Pallas kernels B + C on the fused sequence]
        x_txt = encoder_hidden_states @ p["ctx_emb"]      # context embedder (glue)
        x_img = hidden_states @ p["x_emb"]                # x embedder (glue)
        x = jnp.concatenate([x_txt, x_img], axis=1)       # (B, S_txt+S_img, D)

        # timestep + pooled-prompt conditioning (AdaLN-style modulation, glue)
        temb = timestep_embedding(timesteps, self.t_dim) @ p["w_time"] \
            + pooled_prompt_embeds @ p["w_pool"]
        scale_v, shift_v = jnp.split(temb, 2, axis=-1)
        x = x * (1.0 + scale_v[:, None, :]) + shift_v[:, None, :]
        # TODO(synk): rotary position embeddings from text_ids/img_ids and the guidance
        # embedding of the real FluxTransformer2DModel are not reproduced here.
        del text_ids, img_ids, guidance

        out = flux_ip_attention(x, ip_tokens, p, S_txt=S_txt, ip_scale=self.ip_scale)

        # noise prediction = image-token slice projected back to latent channels (glue)
        noise_pred = out[:, S_txt:, :] @ p["proj_out"]
        return noise_pred


# ----------------------------------------------------------------------------
# main
# ----------------------------------------------------------------------------
if __name__ == "__main__":
    B = 2            # batch
    S_IMG = 16       # packed latent (image) tokens
    S_TXT = 8        # text tokens
    IN_CH = 32       # latent channels per packed token
    JOINT_DIM = 64   # stand-in for transformer.config.joint_attention_dim
    CLIP_DIM = 64    # image_embeds dim
    HIDDEN = 128     # stand-in for hidden_size=3072
    POOLED = 32      # pooled prompt embeds dim
    T_DIM = 32       # timestep embedding dim
    NUM_TOKENS = 4

    key = jax.random.PRNGKey(0)
    kp, k1, k2, k3, k4, k5 = jax.random.split(key, 6)

    params = init_params(kp, clip_dim=CLIP_DIM, num_tokens=NUM_TOKENS, hidden=HIDDEN,
                         in_channels=IN_CH, joint_dim=JOINT_DIM, pooled_dim=POOLED,
                         t_dim=T_DIM)

    hidden_states = jax.random.normal(k1, (B, S_IMG, IN_CH), jnp.float32)
    encoder_hidden_states = jax.random.normal(k2, (B, S_TXT, JOINT_DIM), jnp.float32)
    pooled_prompt_embeds = jax.random.normal(k3, (B, POOLED), jnp.float32)
    image_embeds = jax.random.normal(k4, (B, CLIP_DIM), jnp.float32)
    timesteps = jax.random.uniform(k5, (B,), jnp.float32)
    text_ids = jnp.zeros((S_TXT, 3), jnp.float32)
    img_ids = jnp.zeros((S_IMG, 3), jnp.float32)

    model = FluxIPAdapterPallas(params, num_tokens=NUM_TOKENS, hidden=HIDDEN,
                                t_dim=T_DIM, ip_scale=1.0)

    noise_pred = model(hidden_states, timesteps, encoder_hidden_states,
                       pooled_prompt_embeds, image_embeds, text_ids, img_ids,
                       guidance=None)
    noise_pred = jax.block_until_ready(noise_pred)

    # pure-JAX reference of the Pallas hot paths (mirrors the bf16 operand casts)
    def ref_forward():
        p = params
        bf = jnp.bfloat16
        # kernel A
        y = jnp.dot(image_embeds.astype(bf), p["proj_w"].astype(bf),
                    preferred_element_type=jnp.float32) + p["proj_b"]
        y = y.reshape(B, NUM_TOKENS, HIDDEN)
        mu = y.mean(-1, keepdims=True)
        var = ((y - mu) ** 2).mean(-1, keepdims=True)
        ip = (y - mu) * jax.lax.rsqrt(var + 1e-5) * p["ln_g"] + p["ln_b"]

        x = jnp.concatenate([encoder_hidden_states @ p["ctx_emb"],
                             hidden_states @ p["x_emb"]], axis=1)
        temb = timestep_embedding(timesteps, T_DIM) @ p["w_time"] \
            + pooled_prompt_embeds @ p["w_pool"]
        sc, sh = jnp.split(temb, 2, axis=-1)
        x = x * (1.0 + sc[:, None, :]) + sh[:, None, :]

        xb = x.astype(bf)
        f32 = jnp.float32
        q = jnp.einsum("bsd,de->bse", xb, p["wq"].astype(bf), preferred_element_type=f32)
        k = jnp.einsum("bsd,de->bse", xb, p["wk"].astype(bf), preferred_element_type=f32)
        v = jnp.einsum("bsd,de->bse", xb, p["wv"].astype(bf), preferred_element_type=f32)
        ipb = ip.astype(bf)
        ipk = jnp.einsum("btd,de->bte", ipb, p["wk_ip"].astype(bf), preferred_element_type=f32)
        ipv = jnp.einsum("btd,de->bte", ipb, p["wv_ip"].astype(bf), preferred_element_type=f32)

        s = jnp.einsum("bqd,bkd->bqk", q.astype(bf), k.astype(bf),
                       preferred_element_type=f32) / math.sqrt(HIDDEN)
        s = s - s.max(-1, keepdims=True)
        pr = jnp.exp(s)
        pr = pr / pr.sum(-1, keepdims=True)
        ctx = jnp.einsum("bqk,bkd->bqd", pr.astype(bf), v.astype(bf),
                         preferred_element_type=f32)
        attn = jnp.einsum("bqd,de->bqe", ctx.astype(bf), p["wo"].astype(bf),
                          preferred_element_type=f32)

        s2 = jnp.einsum("bqd,bkd->bqk", q.astype(bf), ipk.astype(bf),
                        preferred_element_type=f32) / math.sqrt(HIDDEN)
        s2 = s2 - s2.max(-1, keepdims=True)
        p2 = jnp.exp(s2)
        p2 = p2 / p2.sum(-1, keepdims=True)
        ia = jnp.einsum("bqk,bkd->bqd", p2.astype(bf), ipv.astype(bf),
                        preferred_element_type=f32)
        out = attn.at[:, S_TXT:, :].add(ia[:, S_TXT:, :])
        return out[:, S_TXT:, :] @ p["proj_out"]

    ref = jax.block_until_ready(ref_forward())
    assert noise_pred.shape == (B, S_IMG, IN_CH)
    assert jnp.allclose(noise_pred, ref, atol=3e-2, rtol=3e-2)
    print("KERNEL_OK")
</pallas_src>

<mosaic_0001>
module attributes {stable_mosaic.version = 11 : i64} {
  func.func @_image_proj_kernel(%arg0: i32, %arg1: memref<2x64xf32, #tpu.memory_space<vmem>>, %arg2: memref<64x128xbf16, #tpu.memory_space<vmem>>, %arg3: memref<1x128xf32, #tpu.memory_space<vmem>>, %arg4: memref<1x128xf32, #tpu.memory_space<vmem>>, %arg5: memref<1x128xf32, #tpu.memory_space<vmem>>, %arg6: memref<2x128xf32, #tpu.memory_space<vmem>>) attributes {dimension_semantics = [#tpu.dimension_semantics<parallel>], iteration_bounds = array<i64: 4>, scalar_prefetch = 0 : i64, scratch_operands = 0 : i64, tpu.core_type = #tpu.core_type<tc>, window_params = [{pipeline_mode = #tpu.pipeline_mode<synchronous>, transform_indices = @transform_0, window_bounds = array<i64: 2, 64>}, {transform_indices = @transform_1, window_bounds = array<i64: 64, 128>}, {transform_indices = @transform_2, window_bounds = array<i64: 1, 128>}, {pipeline_mode = #tpu.pipeline_mode<synchronous>, transform_indices = @transform_3, window_bounds = array<i64: 1, 128>}, {pipeline_mode = #tpu.pipeline_mode<synchronous>, transform_indices = @transform_4, window_bounds = array<i64: 1, 128>}, {transform_indices = @transform_5, window_bounds = array<i64: 2, 128>}]} {
    %c0 = arith.constant 0 : index
    %c0_0 = arith.constant 0 : index
    %0 = vector.load %arg1[%c0, %c0_0] : memref<2x64xf32, #tpu.memory_space<vmem>>, vector<2x64xf32>
    %1 = arith.truncf %0 : vector<2x64xf32> to vector<2x64xbf16>
    %c0_1 = arith.constant 0 : index
    %c0_2 = arith.constant 0 : index
    %2 = vector.load %arg2[%c0_1, %c0_2] : memref<64x128xbf16, #tpu.memory_space<vmem>>, vector<64x128xbf16>
    %cst = arith.constant dense<0.000000e+00> : vector<2x128xf32>
    %3 = tpu.matmul %1, %2, %cst {dimension_numbers = #tpu.dot_dimension_numbers<[1], [0], [0], [1], [0, 0, 1, 1], [], []>} : vector<2x64xbf16>, vector<64x128xbf16>, vector<2x128xf32> -> vector<2x128xf32>
    %c0_3 = arith.constant 0 : index
    %c0_4 = arith.constant 0 : index
    %4 = vector.load %arg3[%c0_3, %c0_4] : memref<1x128xf32, #tpu.memory_space<vmem>>, vector<1x128xf32>
    %5 = vector.broadcast %4 : vector<1x128xf32> to vector<2x128xf32>
    %6 = arith.addf %3, %5 : vector<2x128xf32>
    %cst_5 = arith.constant dense<0.000000e+00> : vector<2xf32>
    %7 = vector.multi_reduction <add>, %6, %cst_5 [1] : vector<2x128xf32> to vector<2xf32>
    %8 = vector.shape_cast %7 : vector<2xf32> to vector<2x1xf32>
    %cst_6 = arith.constant 1.280000e+02 : f32
    %9 = vector.broadcast %cst_6 : f32 to vector<2x1xf32>
    %10 = arith.divf %8, %9 : vector<2x1xf32>
    %11 = vector.broadcast %10 : vector<2x1xf32> to vector<2x128xf32>
    %12 = arith.subf %6, %11 : vector<2x128xf32>
    %13 = arith.mulf %12, %12 : vector<2x128xf32>
    %cst_7 = arith.constant dense<0.000000e+00> : vector<2xf32>
    %14 = vector.multi_reduction <add>, %13, %cst_7 [1] : vector<2x128xf32> to vector<2xf32>
    %15 = vector.shape_cast %14 : vector<2xf32> to vector<2x1xf32>
    %cst_8 = arith.constant 1.280000e+02 : f32
    %16 = vector.broadcast %cst_8 : f32 to vector<2x1xf32>
    %17 = arith.divf %15, %16 : vector<2x1xf32>
    %18 = vector.broadcast %10 : vector<2x1xf32> to vector<2x128xf32>
    %19 = arith.subf %6, %18 : vector<2x128xf32>
    %cst_9 = arith.constant 9.99999974E-6 : f32
    %20 = vector.broadcast %cst_9 : f32 to vector<2x1xf32>
    %21 = arith.addf %17, %20 : vector<2x1xf32>
    %22 = math.rsqrt %21 : vector<2x1xf32>
    %23 = vector.broadcast %22 : vector<2x1xf32> to vector<2x128xf32>
    %24 = arith.mulf %19, %23 : vector<2x128xf32>
    %c0_10 = arith.constant 0 : index
    %c0_11 = arith.constant 0 : index
    %25 = vector.load %arg4[%c0_10, %c0_11] : memref<1x128xf32, #tpu.memory_space<vmem>>, vector<1x128xf32>
    %26 = vector.broadcast %25 : vector<1x128xf32> to vector<2x128xf32>
    %27 = arith.mulf %24, %26 : vector<2x128xf32>
    %c0_12 = arith.constant 0 : index
    %c0_13 = arith.constant 0 : index
    %28 = vector.load %arg5[%c0_12, %c0_13] : memref<1x128xf32, #tpu.memory_space<vmem>>, vector<1x128xf32>
    %29 = vector.broadcast %28 : vector<1x128xf32> to vector<2x128xf32>
    %30 = arith.addf %27, %29 : vector<2x128xf32>
    %c0_14 = arith.constant 0 : index
    %c0_15 = arith.constant 0 : index
    %31 = vector.load %arg6[%c0_14, %c0_15] : memref<2x128xf32, #tpu.memory_space<vmem>>, vector<2x128xf32>
    tpu.vector_store %arg6[%c0_14, %c0_15], %30 {strides = array<i32>} : memref<2x128xf32, #tpu.memory_space<vmem>>, vector<2x128xf32>,
    return
  }
  func.func @transform_0(%arg0: i32) -> (i32, i32) {
    %c0_i32 = arith.constant 0 : i32
    %c0_i32_0 = arith.constant 0 : i32
    %c0_i32_1 = arith.constant 0 : i32
    return %c0_i32, %c0_i32_0 : i32, i32
  }
  func.func @transform_1(%arg0: i32) -> (i32, i32) {
    %c0_i32 = arith.constant 0 : i32
    %c0_i32_0 = arith.constant 0 : i32
    return %c0_i32, %arg0 : i32, i32
  }
  func.func @transform_2(%arg0: i32) -> (i32, i32) {
    %c0_i32 = arith.constant 0 : i32
    %c0_i32_0 = arith.constant 0 : i32
    return %c0_i32, %arg0 : i32, i32
  }
  func.func @transform_3(%arg0: i32) -> (i32, i32) {
    %c0_i32 = arith.constant 0 : i32
    %c0_i32_0 = arith.constant 0 : i32
    %c0_i32_1 = arith.constant 0 : i32
    return %c0_i32, %c0_i32_0 : i32, i32
  }
  func.func @transform_4(%arg0: i32) -> (i32, i32) {
    %c0_i32 = arith.constant 0 : i32
    %c0_i32_0 = arith.constant 0 : i32
    %c0_i32_1 = arith.constant 0 : i32
    return %c0_i32, %c0_i32_0 : i32, i32
  }
  func.func @transform_5(%arg0: i32) -> (i32, i32) {
    %c0_i32 = arith.constant 0 : i32
    %c0_i32_0 = arith.constant 0 : i32
    return %c0_i32, %arg0 : i32, i32
  }
}

</mosaic_0001>

<bundles_post_ra>
// kernel: tpu_custom_call.1
= control target key start
LH: loop header
LB: loop body
LE: loop exit
PB: predicated region body
PF: predicated region fallthrough
CT: control target
= control target key end

     0   :  { %s1037_s0 = inlined_call_operand.hbm [shape: f32[2,64], index: 0, kind: input, shape index: {}]   ;;  %s1038_s1 = inlined_call_operand.hbm [shape: bf16[64,512], index: 1, kind: input, shape index: {}]   ;;  %s1039_s2 = inlined_call_operand.hbm [shape: f32[1,512], index: 2, kind: input, shape index: {}]   ;;  %s1040_s3 = inlined_call_operand.vmem [shape: f32[1,128], index: 3, kind: input, shape index: {}]   ;;  %s1041_s4 = inlined_call_operand.vmem [shape: f32[1,128], index: 4, kind: input, shape index: {}]   ;;  %s1042_s5 = inlined_call_operand.hbm [shape: f32[2,512], index: 5, kind: output, shape index: {}]  }
   0x1   :  { %1048 = sst [smem:[#allocation12_spill]] %s1038_s1 }
   0x2   :  { %10 = vsyncpa [#allocation3], 0 }
   0x3   :  { %11 = vsyncpa [#allocation6], 0 }
   0x4   :  { %13 = vsyncpa [#allocation6 + $0x1], 0 }
   0x5   :  { %14 = vsyncpa [#allocation4], 0 }
   0x6   :  { %16 = vsyncpa [#allocation4 + $0x1], 0  ;;  %s821_s18 = smov 0   ;;  %s823_s19 = smov 0  }
   0x7   :  { %s825_s20 = smov 0   ;;  %s827_s21 = smov 0  }
   0x8 LB: > { %s842_s22 = sadd.s32 1, %s780_s21   ;;  %s50_s23 = sadd.s32 1, %s776_s20  ;;  %s780_s21 = sphi %s827_s21, %s1066_s21   ;;  %s776_s20 = sphi %s825_s20, %s1065_s20   ;;  %s772_s19 = sphi %s823_s19, %s1064_s19   ;;  %s768_s18 = sphi %s821_s18, %s1063_s18  }
   0x9   : > { %s47_s24 = ssub.s32 %s780_s21, %s842_s22  ;;  %p57_p0 = scmp.ne.s32.totalorder %s776_s20, %s772_s19 }
   0xa   : > { %p48_p1 = scmp.eq.s32.totalorder %s47_s24, 0  ;;  %p58_p2 = scmp.eq.s32.totalorder %s780_s21, 0 }
   0xb   : > { %p583_p3 = scmp.lt.s32.totalorder %s780_s21, 4  ;;  %s198_s26 = sand.u32 1, %s780_s21  }
   0xc   : > { %s852_s25 = scalar_select %p48_p1, %s776_s20, %s50_s23  }
   0xd   : > { %p59_p4 = por %p58_p2, %p57_p0  ;;  %s200_s27 = sand.u32 1, %s776_s20  }
   0xe   : > { %s521_s28 = sshll.u32 %s200_s27, 5  ;;  %s522_s29 = sshll.u32 %s780_s21, 6 }
   0xf   : > { %s1049_s1 = sld [smem:[#allocation12_spill]]  ;;  %s202_s8 = scalar_lea.vmem [#allocation5], %s521_s28 }
  0x10   : > { %s208_s9 = sshll.u32 %s202_s8, 4  ;;  %p867_p5 = pnand %p583_p3, %p59_p4  ;;  %s871_s9 = int_to_ptr.vmem [resolvable:$true] %s208_s9 }
  0x11   : > { %s873_s11 = scalar_lea.sflag [#allocation6], %s198_s26 }
  0x12   : > { %p632_p7 = pneg %p867_p5 }
  0x15   : > { %s865_s7 = scalar_lea.hbm %s1049_s1, %s522_s29  ;;  %s635_s15 = scalar_lea.hbm %s1049_s1, 2048 }
  0x16   : > { %s630_s12 = scalar_lea.hbm %s865_s7, 512  ;;  %p636_p10 = scmp.lt.s32.totalorder %s865_s7, %s1049_s1 }
  0x17   : > { %p631_p6 = scmp.ne.s32.totalorder %s865_s7, %s630_s12  ;;  %p637_p11 = scmp.lt.s32.totalorder %s635_s15, %s630_s12 }
  0x19   : > { %p633_p8 = pnand %p632_p7, %p631_p6  ;;  %p638_p12 = por %p637_p11, %p636_p10 }
  0x1b   : > { %p634_p9 = pneg %p633_p8 }
  0x1d   : > { %p639_p13 = pnand %p638_p12, %p634_p9 }
  0x1f   : > { %642 = shalt.err (!%p639_p13)
}
  0x20   : > { %s643_s23 = scalar_lea.vmem %s871_s9, 512  ;;  %s782_s24 = smov [#allocation5]  }
  0x21   : > { %p644_p1 = scmp.ne.s32.totalorder %s871_s9, %s643_s23  ;;  %s648_s26 = sshll.u32 %s782_s24, 4  ;;  %s649_s26 = int_to_ptr.vmem [resolvable:$false] %s648_s26 }
  0x22   : > { %s650_s28 = scalar_lea.vmem %s649_s26, 1024  ;;  %p651_p4 = scmp.lt.s32.totalorder %s871_s9, %s649_s26 }
  0x23   : > { %p646_p2 = pnand %p644_p1, %p632_p7  ;;  %p652_p6 = scmp.lt.s32.totalorder %s650_s28, %s643_s23 }
  0x25   : > { %p647_p3 = pneg %p646_p2  ;;  %p653_p8 = por %p652_p6, %p651_p4 }
  0x27   : > { %p654_p10 = pnand %p653_p8, %p647_p3 }
  0x29   : > { %657 = shalt.err (!%p654_p10)
}
  0x2a   : > { %s783_s29 = smov 256   ;;  %s784_s30 = smov 64  }
  0x2b   : > { %s785_s6 = smov 4   ;;  %s901_s8 = sadd.s32 4294967295, %s780_s21  }
  0x2c   : > { %574 = dma.hbm_to_vmem [thread:$0]  (!%p867_p5), %s865_s7, 512, %s871_s9, %s873_s11, %s783_s29, %s784_s30, %s785_s6  }
  0x2d   : > { %s517_s12 = sadd.s32 4294967294, %s780_s21   ;;  %p63_p9 = scmp.ne.s32.totalorder %s772_s19, %s768_s18 }
  0x2e   : > { %p1043_p11 = scmp.eq.s32.totalorder %s901_s8, 0  ;;  %p155_p12 = scmp.eq.s32.totalorder %s901_s8, 3 }
  0x2f   : > { %p161_p13 = scmp.eq.s32.totalorder %s517_s12, 3  ;;  %p518_p1 = scmp.ge.s32.totalorder %s780_s21, 1 }
  0x30   : > { %p911_p2 = por %p1043_p11, %p63_p9  ;;  %p918_p3 = por %p155_p12, %p57_p0 }
  0x31   : > { %p922_p4 = por %p161_p13, %p63_p9  ;;  %p168_p6 = scmp.lt.s32.totalorder %s780_s21, 5 }
  0x32   : > { %s1051_s13 = scalar_select %p911_p2, 1, 0 }
  0x33   : > { %s1052_s7 = scalar_select %p918_p3, 1, 0 }
  0x34   : > { %s1053_s9 = scalar_select %p922_p4, 1, 0 }
  0x35   : > { %p927_p8 = pnand %p518_p1, %p168_p6  ;;  %s786_s15 = smov [#allocation2]  }
  0x36   : > { %s181_s16 = sshll.u32 %s786_s15, 4  ;;  %s523_s17 = sshll.u32 %s780_s21, 4  ;;  %s931_s16 = int_to_ptr.vmem [resolvable:$true] %s181_s16 }
  0x37   : > { %s1054_s14 = scalar_select %p927_p8, 1, 0 }
  0x38   : > { %p567_p0 = pneg %p927_p8  ;;  %s939_s26 = scalar_lea.hbm %s1039_s2, %s523_s17 }
  0x39   : > { %s221_s28 = scalar_lea.vmem [#allocation7], %s200_s27  ;;  %s658_s6 = scalar_lea.hbm %s939_s26, 16 }
  0x3a   : > { %s228_s29 = sshll.u32 %s221_s28, 4  ;;  %p945_p10 = pnand %p567_p0, %p1043_p11  ;;  %s229_s29 = int_to_ptr.vmem [resolvable:$true] %s228_s29 }
  0x3b   : > { %p659_p9 = scmp.ne.s32.totalorder %s939_s26, %s658_s6  ;;  %s663_s17 = scalar_lea.hbm %s1039_s2, 64 }
  0x3c   : > { %s1055_s30 = scalar_select %p945_p10, 1, 0 }
  0x3d   : > { %p661_p12 = pnand %p659_p9, %p632_p7  ;;  %p664_p1 = scmp.lt.s32.totalorder %s939_s26, %s1039_s2 }
  0x3e   : > { %p665_p6 = scmp.lt.s32.totalorder %s663_s17, %s658_s6 }
  0x3f   : > { %p662_p13 = pneg %p661_p12 }
  0x40   : > { %p666_p0 = por %p665_p6, %p664_p1 }
  0x42   : > { %p667_p11 = pnand %p666_p0, %p662_p13 }
  0x44   : > { %670 = shalt.err (!%p667_p11)
}
  0x45   : > { %s671_s27 = scalar_lea.vmem %s229_s29, 16  ;;  %s787_s28 = smov [#allocation7]  }
  0x46   : > { %p672_p4 = scmp.ne.s32.totalorder %s229_s29, %s671_s27  ;;  %s676_s1 = sshll.u32 %s787_s28, 4  ;;  %s677_s1 = int_to_ptr.vmem [resolvable:$false] %s676_s1 }
  0x47   : > { %s678_s12 = scalar_lea.vmem %s677_s1, 32  ;;  %p679_p12 = scmp.lt.s32.totalorder %s229_s29, %s677_s1 }
  0x48   : > { %p674_p3 = pnand %p672_p4, %p632_p7  ;;  %p680_p2 = scmp.lt.s32.totalorder %s678_s12, %s671_s27 }
  0x4a   : > { %p675_p9 = pneg %p674_p3  ;;  %p681_p8 = por %p680_p2, %p679_p12 }
  0x4c   : > { %p682_p10 = pnand %p681_p8, %p675_p9 }
  0x4e   : > { %685 = shalt.err (!%p682_p10)
}
  0x4f   : > { %577 = dma.hbm_to_vmem [thread:$0]  (!%p867_p5), %s939_s26, 16, %s229_s29, %s873_s11  }
  0x50   : > { %p1056_p7 = scmp.ne.s32.totalorder %s1055_s30, 0  ;;  %s697_s6 = scalar_lea.vmem %s931_s16, 32 }
  0x51   : > { %p698_p3 = scmp.ne.s32.totalorder %s931_s16, %s697_s6  ;;  %p705_p1 = scmp.lt.s32.totalorder %s931_s16, %s931_s16 }
  0x52   : > { %p688_p11 = pneg %p1056_p7  ;;  %p706_p2 = scmp.lt.s32.totalorder %s697_s6, %s697_s6 }
  0x54   : > { %p700_p4 = pnand %p698_p3, %p688_p11  ;;  %p707_p8 = por %p706_p2, %p705_p1 }
  0x56   : > { %p701_p13 = pneg %p700_p4 }
  0x58   : > { %p708_p10 = pnand %p707_p8, %p701_p13 }
  0x5a   : > { %711 = shalt.err (!%p708_p10)
}
  0x5b   : > { %570 = dma.hbm_to_vmem [thread:$0]  (!%p1056_p7), %s1037_s0, 32, %s931_s16, [#allocation3]  }
  0x5c   : > { %p1057_p5 = scmp.ne.s32.totalorder %s1054_s14, 0 }
  0x5d   : > { %p1058_p6 = scmp.eq.s32.totalorder (!%p1057_p5), %s901_s8, 0 }
  0x5e   : > { %237 = sbr.rel (%p1057_p5) target bundleno = 638 (0x27e), region = 40 }
  0x63   : > { %755 = dma.done.wait (%p1058_p6), [#allocation3], 32   ;;  %p1059_p0 = pmov %p1058_p6 }
  0x64   : > { %s243_s11 = sand.u32 1, %s901_s8   ;;  %s988_s26 = sand.u32 1, %s772_s19  }
  0x65   : > { %757 = vsyncadd (%p1059_p0), [#allocation3], 4294967264  ;;  %s526_s29 = sshll.u32 %s988_s26, 5  ;;  %s244_s30 = scalar_lea.sflag [#allocation6], %s243_s11 }
  0x66   : > { %s247_s15 = scalar_lea.vmem [#allocation5], %s526_s29  ;;  %p1060_p9 = scmp.ne.s32.totalorder %s1051_s13, 0 }
  0x68   : > { %759 = dma.done.wait (%p1060_p9), %s244_s30, 528  }
  0x69   : > { %761 = vsyncadd (%p1060_p9), %s244_s30, 4294966768  ;;  %v788_v0 = vmov 0.0   ;;  %vm789_vm0 = vmmov 0   ;;  %v624_v1 = vld [vmem:[%s247_s15 + $0x18] sm:$0xff]   ;;  %v625_v2 = vld [vmem:[%s247_s15 + $0x10] sm:$0xff]   ;;  %vm328_vm1 = vcmask 523264  }
  0x6a   : > { %545 = vmatprep.subr.bf16.mxu0 %v788_v0  ;;  %553 = vmatprep.mubr.msk.bf16.mxu0 %vm789_vm0, %v788_v0  ;;  %v626_v3 = vld [vmem:[%s247_s15 + $0x8] sm:$0xff]   ;;  %v627_v4 = vld [vmem:[%s247_s15] sm:$0xff]   ;;  %v287_v5 = vld [vmem:[#allocation2] sm:$0x3]  ;;  %s255_s13 = scalar_lea.vmem [#allocation7], %s988_s26  ;;  %vm372_vm2 = vcmask 1041408  }
  0x6b   : > { %546 = vmatpush3.bf16.msra.mxu0 %v624_v1  ;;  %v288_v6 = vpack.c.bf16 %v287_v5, %v287_v5  ;;  %v528_v7 = vld [vmem:[%s255_s13] ss:$0 sm:$0xff]  ;;  %s527_s14 = sshll.u32 %s988_s26, 1  ;;  %s537_s27 = sshll.u32 %s901_s8, 5 }
  0x6c   : > { %547 = vmatprep.subr.bf16.mxu0 %v788_v0  ;;  %v534_v23 = vld [vmem:[%s1040_s3] ss:$0 sm:$0xff]  ;;  %s285_s28 = scalar_lea.vmem [#allocation8], %s527_s14  ;;  %s416_s10 = scalar_lea.hbm %s1042_s5, %s537_s27 }
  0x6d   : > { %v535_v25 = vld [vmem:[%s1041_s4] ss:$0 sm:$0xff]  ;;  %s418_s12 = sshll.u32 %s285_s28, 4  ;;  %s405_s11 = scalar_lea.sflag [#allocation4], %s988_s26  ;;  %s419_s12 = int_to_ptr.vmem [resolvable:$true] %s418_s12 }
  0x6e   : > { %s712_s29 = scalar_lea.vmem %s419_s12, 32  ;;  %p1061_p7 = scmp.ne.s32.totalorder %s1052_s7, 0 }
  0x6f   : > { %548 = vmatpush3.bf16.msra.mxu0 %v625_v2  ;;  %p713_p12 = scmp.ne.s32.totalorder %s419_s12, %s712_s29  ;;  %s790_s30 = smov [#allocation8]  }
  0x70   : > { %549 = vmatprep.subr.bf16.mxu0 %v788_v0  ;;  %s716_s15 = sshll.u32 %s790_s30, 4  ;;  %s717_s15 = int_to_ptr.vmem [resolvable:$false] %s716_s15 }
  0x71   : > { %p714_p11 = pnand %p713_p12, %p1061_p7  ;;  %s718_s8 = scalar_lea.vmem %s717_s15, 64 }
  0x72   : > { %p719_p4 = scmp.lt.s32.totalorder %s419_s12, %s717_s15  ;;  %p720_p13 = scmp.lt.s32.totalorder %s718_s8, %s712_s29 }
  0x73   : > { %550 = vmatpush3.bf16.msra.mxu0 %v626_v3  ;;  %p715_p3 = pneg %p714_p11 }
  0x74   : > { %551 = vmatprep.subr.bf16.mxu0 %v788_v0  ;;  %p721_p1 = por %p720_p13, %p719_p4 }
  0x76   : > { %p722_p2 = pnand %p721_p1, %p715_p3 }
  0x77   : > { %552 = vmatpush3.bf16.msra.mxu0 %v627_v4 }
  0x7a   : > { %554 = vmatmul.mubr.msk.bf16.vlgmr.msra.gmra.mxu0 %vm328_vm1, %v288_v6 }
 0x13a   : > { %v366_v8 = vpop.f32.mrf.mxu0 }
 0x13b   : > { %v367_v9 = vadd.f32 %v528_v7, %v366_v8 }
 0x13c   : > { %v555_v10 = vpop.f32.mrf.mxu0 }
 0x13d   : > { %v373_v11 = vsel %vm372_vm2, %v367_v9, 0.0 }
 0x13e   : > { %374 = vadd.xlane.f32.xlu0 %v373_v11  ;;  %v369_v12 = vpop.f32.mrf.mxu0 }
 0x140   : > { %v556_v13 = vpop.f32.mrf.mxu0 }
 0x1c7   : > { %v375_v14 = vpop.xlane.xlu0 %374 }
 0x1c8   : > { %v377_v15 = vmul.f32 0.0078125, %v375_v14 }
 0x1ca   : > { %v378_v16 = vsub.f32 %v367_v9, %v377_v15 }
 0x1cc   : > { %v379_v17 = vmul.f32 %v378_v16, %v378_v16 }
 0x1ce   : > { %v380_v18 = vsel %vm372_vm2, %v379_v17, 0.0 }
 0x1cf   : > { %381 = vadd.xlane.f32.xlu0 %v380_v18 }
 0x258   : > { %v382_v19 = vpop.xlane.xlu0 %381 }
 0x259   : > { %v383_v20 = vmul.f32 0.0078125, %v382_v19 }
 0x25b   : > { %v384_v21 = vadd.f32 1e-05, %v383_v20 }
 0x25d   : > { %628 = vrsqrt.f32 %v384_v21 }
 0x26a   : > { %v629_v22 = vpop.eup %628 }
 0x26b   : > { %v386_v24 = vmul.f32 %v629_v22, %v378_v16 }
 0x26d   : > { %v394_v26 = vmul.f32 %v534_v23, %v386_v24 }
 0x26f   : > { %v402_v27 = vadd.f32 %v535_v25, %v394_v26 }
 0x271   : > { %403 = vst [vmem:[%s285_s28] sm:$0x3] %v402_v27 }
 0x272   : > { %725 = shalt.err (!%p722_p2)
}
 0x273   : > { %s726_s13 = scalar_lea.hbm %s416_s10, 32  ;;  %s730_s16 = scalar_lea.hbm %s1042_s5, 128 }
 0x274   : > { %p727_p8 = scmp.ne.s32.totalorder %s416_s10, %s726_s13  ;;  %p731_p6 = scmp.lt.s32.totalorder %s416_s10, %s1042_s5 }
 0x275   : > { %p732_p0 = scmp.lt.s32.totalorder %s730_s16, %s726_s13 }
 0x276   : > { %p728_p10 = pnand %p727_p8, %p1061_p7 }
 0x277   : > { %p733_p9 = por %p732_p0, %p731_p6 }
 0x278   : > { %p729_p5 = pneg %p728_p10 }
 0x27a   : > { %p734_p12 = pnand %p733_p9, %p729_p5 }
 0x27c   : > { %737 = shalt.err (!%p734_p12)
}
 0x27d   : > { %565 = dma.vmem_to_hbm [thread:$0]  (%p1061_p7), %s419_s12, 32, %s416_s10, %s405_s11  }
 0x27e PF: > { %p585_p11 = scmp.ge.s32.totalorder %s780_s21, 2  ;;  %s430_s24 = sand.u32 1, %s768_s18  }
 0x27f   : > { %p1062_p3 = scmp.ne.s32.totalorder %s1053_s9, 0  ;;  %s431_s27 = scalar_lea.sflag [#allocation4], %s430_s24 }
 0x281   : > { %p579_p4 = pnand %p585_p11, %p1062_p3 }
 0x283   : > { %p580_p13 = pneg %p579_p4 }
 0x285   : > { %763 = dma.done.wait (%p580_p13), %s431_s27, 32  }
 0x286   : > { %765 = vsyncadd (%p580_p13), %s431_s27, 4294967264  ;;  %p19_p1 = scmp.ge.s32.totalorder %s842_s22, 6   ;;  %s1063_s18 = smov %s772_s19 }
 0x287   : > { %s1064_s19 = smov %s776_s20  ;;  %s1065_s20 = smov %s852_s25 }
 0x288   : > { %s1066_s21 = smov %s842_s22  ;;  %21 = sbr.rel (!%p19_p1) target bundleno = 8 (0x8), region = 101 }
 0x28d   :  { %436 = vsyncpa [#allocation3], 1 }
 0x28e   :  { %438 = vsyncpa [#allocation3 + $0x1], 1 }
 0x28f   :  { %439 = vsyncpa [#allocation6], 1 }
 0x290   :  { %441 = vsyncpa [#allocation6 + $0x1], 1 }
 0x291   :  { %442 = vsyncpa [#allocation4], 1 }
 0x292   :  { %444 = vsyncpa [#allocation4 + $0x1], 1 }

</bundles_post_ra>
